<compile_context>
chip_gen: v6e
topology: v6e:2x2x1
jax: 0.10.0
libtpu: 0.0.40
codegen_flags: <defaults>
</compile_context>

<pallas_src>
import math

import numpy as np
import jax
import jax.numpy as jnp
from jax.experimental import pallas as pl
from jax.experimental.pallas import tpu as pltpu


_BLOCK_BYTE_BUDGET = 2 * 1024 * 1024       # per-input-buffer block target (~1-4 MiB sweet spot)
_CLS_FUSED_BYTE_BUDGET = 4 * 1024 * 1024   # allow larger blocks on the fused cls path
_SMALL_TOTAL_BYTES = 512 * 1024            # below this a single block beats any tiling


# ---------------------------------------------------------------------------
# Kernels
# ---------------------------------------------------------------------------
def _pe_add_kernel(x_ref, pe_ref, o_ref):
    # x_ref / o_ref: (TB, TN, D) blocks of x / out; pe_ref: (TN, D) f32 block of the table.
    x = x_ref[...].astype(jnp.float32)
    o_ref[...] = (x + pe_ref[...][None, :, :]).astype(o_ref.dtype)


def _pe_add_cls_kernel(x_ref, pe0_ref, pe_ref, cls_ref, o_ref):
    # x_ref: (TB, N, D); pe0_ref: (1, D); pe_ref: (N, D); cls_ref: (1, 1, D);
    # o_ref: (TB, N+1, D).  Row 0 of the output is cls + pe[0]; row i+1 is x[i] + pe[i+1].
    x = x_ref[...].astype(jnp.float32)
    tb, _, d = x.shape
    row0 = cls_ref[...].astype(jnp.float32) + pe0_ref[...][None, :, :]          # (1, 1, d)
    o_ref[:, 0:1, :] = jnp.broadcast_to(row0, (tb, 1, d)).astype(o_ref.dtype)
    o_ref[:, 1:, :] = (x + pe_ref[...][None, :, :]).astype(o_ref.dtype)


# ---------------------------------------------------------------------------
# The registered buffer `pe`, built exactly like the PyTorch module (__init__)
# ---------------------------------------------------------------------------
def make_positional_encoding_table(max_len, d_model):
    position = np.arange(max_len, dtype=np.float32)[:, None]                    # (L, 1)
    div_term = np.exp(np.arange(0, d_model, 2, dtype=np.float32)
                      * -(math.log(10000.0) / d_model))                         # (D/2,)
    pe = np.zeros((max_len, d_model), dtype=np.float32)
    pe[:, 0::2] = np.sin(position * div_term)
    pe[:, 1::2] = np.cos(position * div_term)
    return jnp.asarray(pe)                                                       # (L, D) f32


# ---------------------------------------------------------------------------
# Tiling policy (byte-budget based, dtype-aware alignment, v7x megacore aware)
# ---------------------------------------------------------------------------
def _sublane_multiple(itemsize):
    # Packed dtypes occupy paired/quad sublanes: 8 (32-bit), 16 (16-bit), 32 (8-bit).
    return max(8, 32 // int(itemsize))


def _choose_tiles(b, n, d, itemsize):
    sub = _sublane_multiple(itemsize)
    total_bytes = b * n * d * itemsize
    if total_bytes <= _SMALL_TOTAL_BYTES:
        return b, n                                     # single block: overhead dominates
    block_rows = max(sub, _BLOCK_BYTE_BUDGET // (d * itemsize))
    if n <= block_rows:                                 # whole seq fits -> tile the batch
        tn = n
        tb = max(1, min(b, block_rows // n))
    else:                                               # long seq -> tile the sequence
        tb = 1
        tn = max(sub, (block_rows // sub) * sub)
    # v7x has 2 TensorCores: keep >=2 grid blocks so neither core idles.
    if pl.cdiv(n, tn) * pl.cdiv(b, tb) < 2:
        if b > 1:
            tb = -(-b // 2)                             # ceil(b/2)
        elif n >= 2 * sub:
            tn = max(sub, ((-(-n // 2)) // sub) * sub)
    return tb, tn


# ---------------------------------------------------------------------------
# Forward pass (eval mode: dropout == identity)
# ---------------------------------------------------------------------------
def positional_encoding_forward(x, pe, *, cls_token=None):
    """x: (b, seq, d_model). pe: (max_len, d_model) f32 buffer.
    Returns (optional cls prepend) x + pe[:seq_out]  (dropout identity, eval mode)."""
    b, n, d = x.shape
    itemsize = int(jnp.dtype(x.dtype).itemsize)

    if cls_token is not None:
        n_out = n + 1
        assert n_out <= pe.shape[0] and d == pe.shape[1]
        if n_out * d * itemsize <= _CLS_FUSED_BYTE_BUDGET:
            # Fused cls path: the kernel writes the cls row directly, so we never
            # materialize a concatenated copy of x in HBM (saves a full extra pass).
            pe_sl = pe[:n_out]                                      # f32
            pe0, pe_body = pe_sl[0:1], pe_sl[1:]                    # tiny wrapper slices
            cls3 = cls_token.reshape(1, 1, d)
            rows = max(1, _CLS_FUSED_BYTE_BUDGET // (d * itemsize))
            tb = max(1, min(b, rows // n_out))
            total_bytes = b * n_out * d * itemsize
            if total_bytes > _SMALL_TOTAL_BYTES and b > 1 and pl.cdiv(b, tb) < 2:
                tb = -(-b // 2)                                     # >=2 blocks (v7x megacore)
            grid = (pl.cdiv(b, tb),)
            cost = pl.CostEstimate(
                flops=b * n_out * d, transcendentals=0,
                bytes_accessed=(b * n * d + b * n_out * d) * itemsize + n_out * d * 4)
            return pl.pallas_call(
                _pe_add_cls_kernel,
                out_shape=jax.ShapeDtypeStruct((b, n_out, d), x.dtype),
                grid=grid,
                in_specs=[
                    pl.BlockSpec((tb, n, d), lambda bi: (bi, 0, 0)),     # x
                    pl.BlockSpec((1, d), lambda bi: (0, 0)),             # pe row 0 (f32)
                    pl.BlockSpec((n, d), lambda bi: (0, 0)),             # pe rows 1..n (f32)
                    pl.BlockSpec((1, 1, d), lambda bi: (0, 0, 0)),       # cls token
                ],
                out_specs=pl.BlockSpec((tb, n_out, d), lambda bi: (bi, 0, 0)),
                compiler_params=pltpu.CompilerParams(
                    dimension_semantics=("parallel",)),
                cost_estimate=cost,
            )(x, pe0, pe_body, cls3)
        # TODO(synk): very long sequences with cls fall back to a wrapper-side concat
        # (one extra HBM pass); a manual-DMA shifted-window kernel would remove it.
        cls_b = jnp.broadcast_to(cls_token.reshape(1, 1, d).astype(x.dtype), (b, 1, d))
        x = jnp.concatenate([cls_b, x], axis=1)
        b, n, d = x.shape

    assert n <= pe.shape[0] and d == pe.shape[1]
    pe_sl = pe[:n]                                       # keep f32; add happens in f32
    tb, tn = _choose_tiles(b, n, d, itemsize)
    grid = (pl.cdiv(n, tn), pl.cdiv(b, tb))              # batch innermost -> pe tile reused

    cost = pl.CostEstimate(
        flops=b * n * d, transcendentals=0,
        bytes_accessed=2 * b * n * d * itemsize + n * d * 4)

    return pl.pallas_call(
        _pe_add_kernel,
        out_shape=jax.ShapeDtypeStruct((b, n, d), x.dtype),
        grid=grid,
        in_specs=[
            pl.BlockSpec((tb, tn, d), lambda ni, bi: (bi, ni, 0)),   # x
            pl.BlockSpec((tn, d), lambda ni, bi: (ni, 0)),           # pe slice (f32)
        ],
        out_specs=pl.BlockSpec((tb, tn, d), lambda ni, bi: (bi, ni, 0)),
        compiler_params=pltpu.CompilerParams(
            dimension_semantics=("parallel", "parallel")),
        cost_estimate=cost,
    )(x, pe_sl)


# ---------------------------------------------------------------------------
# Demo / self-check
# ---------------------------------------------------------------------------
if __name__ == "__main__":
    d_model, max_len = 128, 64          # dropout is identity in eval mode
    batch, seq = 2, 16

    key = jax.random.PRNGKey(0)
    kx, kc, kx2 = jax.random.split(key, 3)
    pe = make_positional_encoding_table(max_len, d_model)

    # --- small shape, cls=False (module default), f32: single-block fallback path ---
    x = jax.random.normal(kx, (batch, seq, d_model), dtype=jnp.float32)
    out = jax.block_until_ready(positional_encoding_forward(x, pe))
    ref = x + pe[None, :seq, :]
    assert out.shape == (batch, seq, d_model), out.shape
    np.testing.assert_allclose(np.asarray(out), np.asarray(ref), rtol=1e-6, atol=1e-6)

    # --- cls=True path: cls row written inside the kernel (no wrapper concat) ---
    cls_token = jax.random.normal(kc, (1, 1, d_model), dtype=jnp.float32)
    out_cls = jax.block_until_ready(
        positional_encoding_forward(x, pe, cls_token=cls_token))
    ref_cls = (jnp.concatenate(
        [jnp.broadcast_to(cls_token, (batch, 1, d_model)), x], axis=1)
        + pe[None, :seq + 1, :])
    assert out_cls.shape == (batch, seq + 1, d_model), out_cls.shape
    np.testing.assert_allclose(np.asarray(out_cls), np.asarray(ref_cls),
                               rtol=1e-6, atol=1e-6)

    # --- medium shape: exercises the batch-tiled path (grid has >=2 blocks) ---
    pe2 = make_positional_encoding_table(1024, d_model)
    x2 = jax.random.normal(kx2, (4, 512, d_model), dtype=jnp.float32)
    out2 = jax.block_until_ready(positional_encoding_forward(x2, pe2))
    np.testing.assert_allclose(np.asarray(out2),
                               np.asarray(x2 + pe2[None, :512, :]),
                               rtol=1e-6, atol=1e-6)

    # --- bf16 activations: pe stays f32, add in f32, cast on store ---
    x_bf = x.astype(jnp.bfloat16)
    out_bf = jax.block_until_ready(positional_encoding_forward(x_bf, pe))
    ref_bf = (x_bf.astype(jnp.float32) + pe[None, :seq, :]).astype(jnp.bfloat16)
    np.testing.assert_allclose(np.asarray(out_bf.astype(jnp.float32)),
                               np.asarray(ref_bf.astype(jnp.float32)),
                               rtol=1e-2, atol=1e-2)

    print("KERNEL_OK")
</pallas_src>

<mosaic_0001>
module attributes {stable_mosaic.version = 11 : i64} {
  func.func @_pe_add_kernel(%arg0: i32, %arg1: i32, %arg2: memref<2x16x128xf32, #tpu.memory_space<vmem>>, %arg3: memref<16x128xf32, #tpu.memory_space<vmem>>, %arg4: memref<2x16x128xf32, #tpu.memory_space<vmem>>) attributes {dimension_semantics = [#tpu.dimension_semantics<parallel>, #tpu.dimension_semantics<parallel>], iteration_bounds = array<i64: 1, 1>, scalar_prefetch = 0 : i64, scratch_operands = 0 : i64, tpu.core_type = #tpu.core_type<tc>, window_params = [{transform_indices = @transform_0, window_bounds = array<i64: 2, 16, 128>}, {transform_indices = @transform_1, window_bounds = array<i64: 16, 128>}, {transform_indices = @transform_2, window_bounds = array<i64: 2, 16, 128>}]} {
    %c0 = arith.constant 0 : index
    %c0_0 = arith.constant 0 : index
    %c0_1 = arith.constant 0 : index
    %0 = vector.load %arg2[%c0, %c0_0, %c0_1] : memref<2x16x128xf32, #tpu.memory_space<vmem>>, vector<2x16x128xf32>
    %c0_2 = arith.constant 0 : index
    %c0_3 = arith.constant 0 : index
    %1 = vector.load %arg3[%c0_2, %c0_3] : memref<16x128xf32, #tpu.memory_space<vmem>>, vector<16x128xf32>
    %2 = vector.shape_cast %1 : vector<16x128xf32> to vector<1x16x128xf32>
    %3 = vector.broadcast %2 : vector<1x16x128xf32> to vector<2x16x128xf32>
    %4 = arith.addf %0, %3 : vector<2x16x128xf32>
    %c0_4 = arith.constant 0 : index
    %c0_5 = arith.constant 0 : index
    %c0_6 = arith.constant 0 : index
    %5 = vector.load %arg4[%c0_4, %c0_5, %c0_6] : memref<2x16x128xf32, #tpu.memory_space<vmem>>, vector<2x16x128xf32>
    tpu.vector_store %arg4[%c0_4, %c0_5, %c0_6], %4 {strides = array<i32>} : memref<2x16x128xf32, #tpu.memory_space<vmem>>, vector<2x16x128xf32>,
    return
  }
  func.func @transform_0(%arg0: i32, %arg1: i32) -> (i32, i32, i32) {
    %c0_i32 = arith.constant 0 : i32
    %c0_i32_0 = arith.constant 0 : i32
    return %arg1, %arg0, %c0_i32 : i32, i32, i32
  }
  func.func @transform_1(%arg0: i32, %arg1: i32) -> (i32, i32) {
    %c0_i32 = arith.constant 0 : i32
    %c0_i32_0 = arith.constant 0 : i32
    return %arg0, %c0_i32 : i32, i32
  }
  func.func @transform_2(%arg0: i32, %arg1: i32) -> (i32, i32, i32) {
    %c0_i32 = arith.constant 0 : i32
    %c0_i32_0 = arith.constant 0 : i32
    return %arg1, %arg0, %c0_i32 : i32, i32, i32
  }
}

</mosaic_0001>

<bundles_post_ra>
// kernel: tpu_custom_call.1
= control target key start
LH: loop header
LB: loop body
LE: loop exit
PB: predicated region body
PF: predicated region fallthrough
CT: control target
= control target key end

     0   :  { %7 = vsyncpa [#allocation3], 0  ;;  %s181_s0 = inlined_call_operand.hbm [shape: f32[2,16,128], index: 0, kind: input, shape index: {}]   ;;  %s182_s1 = inlined_call_operand.hbm [shape: f32[16,128], index: 1, kind: input, shape index: {}]   ;;  %s183_s2 = inlined_call_operand.hbm [shape: f32[2,16,128], index: 2, kind: output, shape index: {}]  }
   0x1   :  { %8 = vsyncpa [#allocation6], 0 }
   0x2   :  { %9 = vsyncpa [#allocation4], 0  ;;  %s143_s9 = smov [#allocation2]  }
   0x3   :  { %s15_s10 = sshll.u32 %s143_s9, 4  ;;  %s16_s10 = int_to_ptr.vmem [resolvable:$true] %s15_s10 }
   0x4   :  { %s85_s11 = scalar_lea.vmem %s16_s10, 512  ;;  %p90_p1 = scmp.lt.s32.totalorder %s16_s10, %s16_s10 }
   0x5   :  { %p86_p0 = scmp.ne.s32.totalorder %s16_s10, %s85_s11  ;;  %p91_p2 = scmp.lt.s32.totalorder %s85_s11, %s85_s11 }
   0x7   :  { %p92_p3 = por %p91_p2, %p90_p1 }
   0x9   :  { %p93_p4 = pnand %p92_p3, %p86_p0 }
   0xb   :  { %96 = shalt.err (!%p93_p4)
}
   0xc   :  { %s144_s12 = smov 128   ;;  %s145_s13 = smov 8  }
   0xd   :  { %21 = dma.hbm_to_vmem [thread:$0]  %s181_s0, 512, %s16_s10, [#allocation3], %s144_s12, %s144_s12, %s145_s13  }
   0xe   :  { %s146_s16 = smov [#allocation5]  }
   0xf   :  { %s27_s17 = sshll.u32 %s146_s16, 4  ;;  %s28_s17 = int_to_ptr.vmem [resolvable:$true] %s27_s17 }
  0x10   :  { %s105_s18 = scalar_lea.vmem %s28_s17, 256  ;;  %p110_p6 = scmp.lt.s32.totalorder %s28_s17, %s28_s17 }
  0x11   :  { %p106_p5 = scmp.ne.s32.totalorder %s28_s17, %s105_s18  ;;  %p111_p7 = scmp.lt.s32.totalorder %s105_s18, %s105_s18 }
  0x13   :  { %p112_p8 = por %p111_p7, %p110_p6 }
  0x15   :  { %p113_p9 = pnand %p112_p8, %p106_p5 }
  0x17   :  { %116 = shalt.err (!%p113_p9)
}
  0x18   :  { %33 = dma.hbm_to_vmem [thread:$0]  %s182_s1, 256, %s28_s17, [#allocation6], %s144_s12, %s144_s12, %s145_s13  }
  0x19   :  { %137 = dma.done.wait [#allocation3], 512  }
  0x1a   :  { %138 = vsyncadd [#allocation3], 4294966784 }
  0x1b   :  { %139 = dma.done.wait [#allocation6], 256  }
  0x1c   :  { %140 = vsyncadd [#allocation6], 4294967040  ;;  %s147_s0 = smov [#allocation7]   ;;  %v40_v0 = vld [vmem:[#allocation2] sm:$0xff]  ;;  %v41_v2 = vld [vmem:[#allocation2 + $0x8] sm:$0xff] }
  0x1d   :  { %s59_s21 = sshll.u32 %s147_s0, 4  ;;  %v44_v1 = vld [vmem:[#allocation5] sm:$0xff]  ;;  %v45_v4 = vld [vmem:[#allocation5 + $0x8] sm:$0xff]  ;;  %v42_v5 = vld [vmem:[#allocation2 + $0x10] sm:$0xff]  ;;  %s60_s21 = int_to_ptr.vmem [resolvable:$true] %s59_s21 }
  0x1e   :  { %v46_v3 = vadd.f32 %v44_v1, %v40_v0  ;;  %v43_v6 = vld [vmem:[#allocation2 + $0x18] sm:$0xff]  ;;  %v47_v7 = vadd.f32 %v45_v4, %v41_v2  ;;  %v48_v8 = vadd.f32 %v44_v1, %v42_v5  ;;  %s117_s1 = scalar_lea.vmem %s60_s21, 512  ;;  %p122_p11 = scmp.lt.s32.totalorder %s60_s21, %s60_s21 }
  0x1f   :  { %v49_v9 = vadd.f32 %v45_v4, %v43_v6  ;;  %p118_p10 = scmp.ne.s32.totalorder %s60_s21, %s117_s1  ;;  %p123_p12 = scmp.lt.s32.totalorder %s117_s1, %s117_s1 }
  0x20   :  { %50 = vst [vmem:[#allocation7] sm:$0xff] %v46_v3  ;;  %51 = vst [vmem:[#allocation7 + $0x8] sm:$0xff] %v47_v7 }
  0x21   :  { %52 = vst [vmem:[#allocation7 + $0x10] sm:$0xff] %v48_v8  ;;  %53 = vst [vmem:[#allocation7 + $0x18] sm:$0xff] %v49_v9  ;;  %p124_p13 = por %p123_p12, %p122_p11 }
  0x23   :  { %p125_p0 = pnand %p124_p13, %p118_p10 }
  0x25   :  { %128 = shalt.err (!%p125_p0)
}
  0x26   :  { %65 = dma.vmem_to_hbm [thread:$0]  %s60_s21, 512, %s183_s2, [#allocation4], %s144_s12, %s144_s12, %s145_s13  }
  0x27   :  { %141 = dma.done.wait [#allocation4], 512  }
  0x28   :  { %142 = vsyncadd [#allocation4], 4294966784 }
  0x29   :  { %69 = vsyncpa [#allocation3], 1 }
  0x2a   :  { %70 = vsyncpa [#allocation6], 1 }
  0x2b   :  { %71 = vsyncpa [#allocation4], 1 }

</bundles_post_ra>
